<compile_context>
chip_gen: v7x
topology: tpu7x:2x2x1
jax: 0.10.0
libtpu: 0.0.40
codegen_flags: <defaults>
</compile_context>

<pallas_src>
import functools

import jax
import jax.numpy as jnp
from jax.experimental import pallas as pl
from jax.experimental.pallas import tpu as pltpu

_LANE = 128


def _round_up(v, m):
    return ((v + m - 1) // m) * m


def _encoder_kernel(eps_ref,                # SMEM [L]  (scalar prefetch)
                    x0_ref,                 # [N, P]   padded input features (layer 0)
                    adj_ref,                # [N, N]   bf16 adjacency ({0,1} -> exact)
                    w1_ref, w2_ref,         # [1, P, P] per-layer padded weights
                    vec_ref,                # [1, 4, P] rows: b1, b2, gamma, beta
                    pool_ref,               # [G, N]   one-hot graph pooling matrix
                    out_x_ref,              # [1, N, P]
                    out_pool_ref,           # [1, G, P]
                    x_carry,                # VMEM [N, P]  activation carry across layers
                    adj_sc):                # VMEM [N, N]  f32 adjacency (cast once)
    l = pl.program_id(0)

    @pl.when(l == 0)
    def _():
        x_carry[...] = x0_ref[...]
        adj_sc[...] = adj_ref[...].astype(jnp.float32)

    x = x_carry[...]
    eps = eps_ref[l]

    # DenseGINConv aggregation: adj @ x + (1 + eps) * x
    agg = jnp.dot(adj_sc[...], x, preferred_element_type=jnp.float32) + (1.0 + eps) * x

    vec = vec_ref[0]
    b1 = vec[0:1, :]
    b2 = vec[1:2, :]
    gamma = vec[2:3, :]
    beta = vec[3:4, :]

    # GIN MLP: Linear -> ReLU -> Linear, then the outer ReLU of Encoder.forward.
    h = jnp.dot(agg, w1_ref[0], preferred_element_type=jnp.float32) + b1
    h = jnp.maximum(h, 0.0)
    h = jnp.dot(h, w2_ref[0], preferred_element_type=jnp.float32) + b2
    h = jnp.maximum(h, 0.0)

    # BatchNorm1d, training mode: biased batch statistics over nodes (axis 0).
    mean = jnp.mean(h, axis=0, keepdims=True)
    cent = h - mean
    var = jnp.mean(cent * cent, axis=0, keepdims=True)
    xbn = cent * jax.lax.rsqrt(var + 1e-5) * gamma + beta

    x_carry[...] = xbn      # feed next layer; stays in VMEM (no HBM roundtrip)
    out_x_ref[0] = xbn
    # global_add_pool(x, batch) == one-hot [G, N] @ x
    out_pool_ref[0] = jnp.dot(pool_ref[...], xbn, preferred_element_type=jnp.float32)


def encoder_forward(x, adj, batch, params, *, num_graphs, dim):
    """All GIN layers fused into a single Pallas call."""
    n, f = x.shape
    num_layers = len(params)
    p_dim = _round_up(max(f, dim), _LANE)   # common padded lane width

    # ---- pack + zero-pad params into stacked lane-dense operands ----
    w1_all = jnp.zeros((num_layers, p_dim, p_dim), jnp.float32)
    w2_all = jnp.zeros((num_layers, p_dim, p_dim), jnp.float32)
    vec_all = jnp.zeros((num_layers, 4, p_dim), jnp.float32)
    eps_all = jnp.zeros((num_layers,), jnp.float32)
    for i, p in enumerate(params):
        in_dim = f if i == 0 else dim
        w1_all = w1_all.at[i, :in_dim, :dim].set(p["w1"])
        w2_all = w2_all.at[i, :dim, :dim].set(p["w2"])
        vec_all = vec_all.at[i, 0, :dim].set(p["b1"][0])
        vec_all = vec_all.at[i, 1, :dim].set(p["b2"][0])
        vec_all = vec_all.at[i, 2, :dim].set(p["gamma"][0])
        vec_all = vec_all.at[i, 3, :dim].set(p["beta"][0])
        eps_all = eps_all.at[i].set(p["eps"][0])

    x0p = jnp.zeros((n, p_dim), jnp.float32).at[:, :f].set(x)
    adj_bf16 = adj.astype(jnp.bfloat16)   # exact: adjacency entries are {0, 1}
    pool_mat = (batch[None, :] == jnp.arange(num_graphs)[:, None]).astype(jnp.float32)

    grid_spec = pltpu.PrefetchScalarGridSpec(
        num_scalar_prefetch=1,                                     # eps -> SMEM
        grid=(num_layers,),
        in_specs=[
            pl.BlockSpec((n, p_dim), lambda l, eps: (0, 0)),       # x0   (resident)
            pl.BlockSpec((n, n), lambda l, eps: (0, 0)),           # adj  (resident)
            pl.BlockSpec((1, p_dim, p_dim), lambda l, eps: (l, 0, 0)),  # w1 streamed
            pl.BlockSpec((1, p_dim, p_dim), lambda l, eps: (l, 0, 0)),  # w2 streamed
            pl.BlockSpec((1, 4, p_dim), lambda l, eps: (l, 0, 0)),      # b/gamma/beta
            pl.BlockSpec((num_graphs, n), lambda l, eps: (0, 0)),  # pool (resident)
        ],
        out_specs=[
            pl.BlockSpec((1, n, p_dim), lambda l, eps: (l, 0, 0)),
            pl.BlockSpec((1, num_graphs, p_dim), lambda l, eps: (l, 0, 0)),
        ],
        scratch_shapes=[
            pltpu.VMEM((n, p_dim), jnp.float32),    # activation carry
            pltpu.VMEM((n, n), jnp.float32),        # f32 adjacency (cast once)
        ],
    )

    flops = 2 * num_layers * (n * n * p_dim + 2 * n * p_dim * p_dim
                              + num_graphs * n * p_dim)
    bytes_accessed = (2 * n * n
                      + 4 * (n * p_dim + 2 * num_layers * p_dim * p_dim
                             + 4 * num_layers * p_dim + num_graphs * n
                             + num_layers * n * p_dim
                             + num_layers * num_graphs * p_dim))
    cost = pl.CostEstimate(flops=flops, transcendentals=num_layers * p_dim,
                           bytes_accessed=bytes_accessed)

    out_x, out_pool = pl.pallas_call(
        _encoder_kernel,
        grid_spec=grid_spec,
        out_shape=(
            jax.ShapeDtypeStruct((num_layers, n, p_dim), jnp.float32),
            jax.ShapeDtypeStruct((num_layers, num_graphs, p_dim), jnp.float32),
        ),
        compiler_params=pltpu.CompilerParams(
            dimension_semantics=("arbitrary",),   # layers are sequentially dependent
        ),
        cost_estimate=cost,
    )(eps_all, x0p, adj_bf16, w1_all, w2_all, vec_all, pool_mat)

    # Strip the lane padding and lay out as the torch concatenation order.
    xs_cat = jnp.transpose(out_x[:, :, :dim], (1, 0, 2)).reshape(n, num_layers * dim)
    xpool_cat = jnp.transpose(out_pool[:, :, :dim], (1, 0, 2)).reshape(
        num_graphs, num_layers * dim)
    return xpool_cat, xs_cat


def init_encoder_params(key, num_features, dim, num_gc_layers):
    """Deterministic parameter init matching the module's __init__ shapes."""
    params = []
    for i in range(num_gc_layers):
        in_dim = num_features if i == 0 else dim
        key, k1, k2 = jax.random.split(key, 3)
        w1 = (jax.random.normal(k1, (in_dim, dim), jnp.float32)
              / jnp.sqrt(jnp.float32(in_dim)))
        b1 = jnp.zeros((1, dim), jnp.float32)
        w2 = (jax.random.normal(k2, (dim, dim), jnp.float32)
              / jnp.sqrt(jnp.float32(dim)))
        b2 = jnp.zeros((1, dim), jnp.float32)
        gamma = jnp.ones((1, dim), jnp.float32)      # BatchNorm1d weight default
        beta = jnp.zeros((1, dim), jnp.float32)      # BatchNorm1d bias default
        eps = jnp.zeros((1,), jnp.float32)           # Parameter(torch.zeros(L)) per layer
        params.append(dict(w1=w1, b1=b1, w2=w2, b2=b2,
                           gamma=gamma, beta=beta, eps=eps))
    return params


def encoder_reference(x, adj, batch, params, num_graphs):
    """Pure-JAX reference for correctness checking."""
    pool_mat = (batch[None, :] == jnp.arange(num_graphs)[:, None]).astype(jnp.float32)
    xs, xpool = [], []
    for p in params:
        agg = adj @ x + (1.0 + p["eps"][0]) * x
        h = jnp.maximum(agg @ p["w1"] + p["b1"], 0.0)
        h = h @ p["w2"] + p["b2"]
        h = jnp.maximum(h, 0.0)
        mean = jnp.mean(h, axis=0, keepdims=True)
        var = jnp.mean((h - mean) ** 2, axis=0, keepdims=True)
        x = (h - mean) * jax.lax.rsqrt(var + 1e-5) * p["gamma"] + p["beta"]
        xs.append(x)
        xpool.append(pool_mat @ x)
    return jnp.concatenate(xpool, axis=1), jnp.concatenate(xs, axis=1)


if __name__ == "__main__":
    # Small, module-consistent shapes.
    num_nodes = 64          # N (multiple of 8 sublanes)
    num_features = 16       # data.x feature dim
    dim = 32                # hidden dim
    num_gc_layers = 3       # L
    num_graphs = 4          # distinct values in `batch`

    key = jax.random.PRNGKey(0)
    key, kx, ka = jax.random.split(key, 3)

    # Node features [N, F]
    x = jax.random.normal(kx, (num_nodes, num_features), jnp.float32)

    # Dense symmetric adjacency with no self-loops (stands in for the
    # sparse_coo_tensor built from data.edge_index in the torch code).
    a = (jax.random.uniform(ka, (num_nodes, num_nodes)) < 0.1).astype(jnp.float32)
    adj = jnp.clip(a + a.T, 0.0, 1.0) * (1.0 - jnp.eye(num_nodes, dtype=jnp.float32))

    # batch assignment: 4 graphs of 16 nodes each
    batch = jnp.repeat(jnp.arange(num_graphs, dtype=jnp.int32),
                       num_nodes // num_graphs)

    params = init_encoder_params(key, num_features, dim, num_gc_layers)

    fwd = jax.jit(functools.partial(encoder_forward, num_graphs=num_graphs, dim=dim))
    xpool_cat, xs_cat = fwd(x, adj, batch, params)
    jax.block_until_ready((xpool_cat, xs_cat))

    # Sanity check against pure-JAX reference.
    ref_pool, ref_xs = encoder_reference(x, adj, batch, params, num_graphs)
    assert xpool_cat.shape == (num_graphs, num_gc_layers * dim)
    assert xs_cat.shape == (num_nodes, num_gc_layers * dim)
    assert jnp.allclose(xpool_cat, ref_pool, atol=1e-4, rtol=1e-4)
    assert jnp.allclose(xs_cat, ref_xs, atol=1e-4, rtol=1e-4)

    # TODO(synk): DenseGINConv source is not in the provided file; a standard
    # GIN conv (MLP(adj@x + (1+eps)*x), eps=0) is used here. BatchNorm running
    # statistics (eval mode) are not tracked — training-mode semantics only.
    print("KERNEL_OK")
</pallas_src>

<mosaic_0001>
module attributes {stable_mosaic.version = 11 : i64} {
  func.func @_encoder_kernel(%arg0: i32, %arg1: memref<3xf32, #tpu.memory_space<smem>>, %arg2: memref<64x128xf32, #tpu.memory_space<vmem>>, %arg3: memref<64x64xbf16, #tpu.memory_space<vmem>>, %arg4: memref<1x128x128xf32, #tpu.memory_space<vmem>>, %arg5: memref<1x128x128xf32, #tpu.memory_space<vmem>>, %arg6: memref<1x4x128xf32, #tpu.memory_space<vmem>>, %arg7: memref<4x64xf32, #tpu.memory_space<vmem>>, %arg8: memref<1x64x128xf32, #tpu.memory_space<vmem>>, %arg9: memref<1x4x128xf32, #tpu.memory_space<vmem>>, %arg10: memref<64x128xf32, #tpu.memory_space<vmem>>, %arg11: memref<64x64xf32, #tpu.memory_space<vmem>>) attributes {dimension_semantics = [#tpu.dimension_semantics<arbitrary>], iteration_bounds = array<i64: 3>, scalar_prefetch = 1 : i64, scratch_operands = 2 : i64, tpu.core_type = #tpu.core_type<tc>, window_params = [{pipeline_mode = #tpu.pipeline_mode<synchronous>, transform_indices = @transform_0, window_bounds = array<i64: 64, 128>}, {pipeline_mode = #tpu.pipeline_mode<synchronous>, transform_indices = @transform_1, window_bounds = array<i64: 64, 64>}, {transform_indices = @transform_2, window_bounds = array<i64: 1, 128, 128>}, {transform_indices = @transform_3, window_bounds = array<i64: 1, 128, 128>}, {transform_indices = @transform_4, window_bounds = array<i64: 1, 4, 128>}, {pipeline_mode = #tpu.pipeline_mode<synchronous>, transform_indices = @transform_5, window_bounds = array<i64: 4, 64>}, {transform_indices = @transform_6, window_bounds = array<i64: 1, 64, 128>}, {transform_indices = @transform_7, window_bounds = array<i64: 1, 4, 128>}]} {
    %c0_i32 = arith.constant 0 : i32
    %0 = arith.cmpi eq, %arg0, %c0_i32 : i32
    %1 = arith.extui %0 : i1 to i32
    %c0_i32_0 = arith.constant 0 : i32
    %2 = arith.cmpi ne, %1, %c0_i32_0 : i32
    scf.if %2 {
      %c0_34 = arith.constant 0 : index
      %c0_35 = arith.constant 0 : index
      %61 = vector.load %arg2[%c0_34, %c0_35] : memref<64x128xf32, #tpu.memory_space<vmem>>, vector<64x128xf32>
      %c0_36 = arith.constant 0 : index
      %c0_37 = arith.constant 0 : index
      %62 = vector.load %arg10[%c0_36, %c0_37] : memref<64x128xf32, #tpu.memory_space<vmem>>, vector<64x128xf32>
      tpu.vector_store %arg10[%c0_36, %c0_37], %61 {strides = array<i32>} : memref<64x128xf32, #tpu.memory_space<vmem>>, vector<64x128xf32>,
      %c0_38 = arith.constant 0 : index
      %c0_39 = arith.constant 0 : index
      %63 = vector.load %arg3[%c0_38, %c0_39] : memref<64x64xbf16, #tpu.memory_space<vmem>>, vector<64x64xbf16>
      %64 = arith.extf %63 : vector<64x64xbf16> to vector<64x64xf32>
      %c0_40 = arith.constant 0 : index
      %c0_41 = arith.constant 0 : index
      %65 = vector.load %arg11[%c0_40, %c0_41] : memref<64x64xf32, #tpu.memory_space<vmem>>, vector<64x64xf32>
      tpu.vector_store %arg11[%c0_40, %c0_41], %64 {strides = array<i32>} : memref<64x64xf32, #tpu.memory_space<vmem>>, vector<64x64xf32>,
    } else {
    }
    %c0 = arith.constant 0 : index
    %c0_1 = arith.constant 0 : index
    %3 = vector.load %arg10[%c0, %c0_1] : memref<64x128xf32, #tpu.memory_space<vmem>>, vector<64x128xf32>
    %4 = arith.index_cast %arg0 : i32 to index
    %5 = memref.load %arg1[%4] : memref<3xf32, #tpu.memory_space<smem>>
    %c0_2 = arith.constant 0 : index
    %c0_3 = arith.constant 0 : index
    %6 = vector.load %arg11[%c0_2, %c0_3] : memref<64x64xf32, #tpu.memory_space<vmem>>, vector<64x64xf32>
    %cst = arith.constant dense<0.000000e+00> : vector<64x128xf32>
    %7 = tpu.matmul %6, %3, %cst {dimension_numbers = #tpu.dot_dimension_numbers<[1], [0], [0], [1], [0, 0, 1, 1], [], []>} : vector<64x64xf32>, vector<64x128xf32>, vector<64x128xf32> -> vector<64x128xf32>
    %cst_4 = arith.constant 1.000000e+00 : f32
    %8 = arith.addf %cst_4, %5 : f32
    %9 = vector.broadcast %8 : f32 to vector<64x128xf32>
    %10 = arith.mulf %9, %3 : vector<64x128xf32>
    %11 = arith.addf %7, %10 : vector<64x128xf32>
    %c0_5 = arith.constant 0 : index
    %c0_6 = arith.constant 0 : index
    %c0_7 = arith.constant 0 : index
    %12 = vector.load %arg6[%c0_5, %c0_6, %c0_7] : memref<1x4x128xf32, #tpu.memory_space<vmem>>, vector<1x4x128xf32>
    %13 = vector.shape_cast %12 : vector<1x4x128xf32> to vector<4x128xf32>
    %14 = vector.extract_strided_slice %13 {offsets = [0, 0], sizes = [1, 128], strides = [1, 1]} : vector<4x128xf32> to vector<1x128xf32>
    %15 = vector.extract_strided_slice %13 {offsets = [1, 0], sizes = [1, 128], strides = [1, 1]} : vector<4x128xf32> to vector<1x128xf32>
    %16 = vector.extract_strided_slice %13 {offsets = [2, 0], sizes = [1, 128], strides = [1, 1]} : vector<4x128xf32> to vector<1x128xf32>
    %17 = vector.extract_strided_slice %13 {offsets = [3, 0], sizes = [1, 128], strides = [1, 1]} : vector<4x128xf32> to vector<1x128xf32>
    %c0_8 = arith.constant 0 : index
    %c0_9 = arith.constant 0 : index
    %c0_10 = arith.constant 0 : index
    %18 = vector.load %arg4[%c0_8, %c0_9, %c0_10] : memref<1x128x128xf32, #tpu.memory_space<vmem>>, vector<1x128x128xf32>
    %19 = vector.shape_cast %18 : vector<1x128x128xf32> to vector<128x128xf32>
    %cst_11 = arith.constant dense<0.000000e+00> : vector<64x128xf32>
    %20 = tpu.matmul %11, %19, %cst_11 {dimension_numbers = #tpu.dot_dimension_numbers<[1], [0], [0], [1], [0, 0, 1, 1], [], []>} : vector<64x128xf32>, vector<128x128xf32>, vector<64x128xf32> -> vector<64x128xf32>
    %21 = vector.broadcast %14 : vector<1x128xf32> to vector<64x128xf32>
    %22 = arith.addf %20, %21 : vector<64x128xf32>
    %cst_12 = arith.constant 0.000000e+00 : f32
    %23 = vector.broadcast %cst_12 : f32 to vector<64x128xf32>
    %24 = arith.maximumf %22, %23 : vector<64x128xf32>
    %c0_13 = arith.constant 0 : index
    %c0_14 = arith.constant 0 : index
    %c0_15 = arith.constant 0 : index
    %25 = vector.load %arg5[%c0_13, %c0_14, %c0_15] : memref<1x128x128xf32, #tpu.memory_space<vmem>>, vector<1x128x128xf32>
    %26 = vector.shape_cast %25 : vector<1x128x128xf32> to vector<128x128xf32>
    %cst_16 = arith.constant dense<0.000000e+00> : vector<64x128xf32>
    %27 = tpu.matmul %24, %26, %cst_16 {dimension_numbers = #tpu.dot_dimension_numbers<[1], [0], [0], [1], [0, 0, 1, 1], [], []>} : vector<64x128xf32>, vector<128x128xf32>, vector<64x128xf32> -> vector<64x128xf32>
    %28 = vector.broadcast %15 : vector<1x128xf32> to vector<64x128xf32>
    %29 = arith.addf %27, %28 : vector<64x128xf32>
    %cst_17 = arith.constant 0.000000e+00 : f32
    %30 = vector.broadcast %cst_17 : f32 to vector<64x128xf32>
    %31 = arith.maximumf %29, %30 : vector<64x128xf32>
    %cst_18 = arith.constant dense<0.000000e+00> : vector<128xf32>
    %32 = vector.multi_reduction <add>, %31, %cst_18 [0] : vector<64x128xf32> to vector<128xf32>
    %33 = vector.shape_cast %32 : vector<128xf32> to vector<1x128xf32>
    %cst_19 = arith.constant 6.400000e+01 : f32
    %34 = vector.broadcast %cst_19 : f32 to vector<1x128xf32>
    %35 = arith.divf %33, %34 : vector<1x128xf32>
    %36 = vector.broadcast %35 : vector<1x128xf32> to vector<64x128xf32>
    %37 = arith.subf %31, %36 : vector<64x128xf32>
    %38 = arith.mulf %37, %37 : vector<64x128xf32>
    %cst_20 = arith.constant dense<0.000000e+00> : vector<128xf32>
    %39 = vector.multi_reduction <add>, %38, %cst_20 [0] : vector<64x128xf32> to vector<128xf32>
    %40 = vector.shape_cast %39 : vector<128xf32> to vector<1x128xf32>
    %cst_21 = arith.constant 6.400000e+01 : f32
    %41 = vector.broadcast %cst_21 : f32 to vector<1x128xf32>
    %42 = arith.divf %40, %41 : vector<1x128xf32>
    %cst_22 = arith.constant 9.99999974E-6 : f32
    %43 = vector.broadcast %cst_22 : f32 to vector<1x128xf32>
    %44 = arith.addf %42, %43 : vector<1x128xf32>
    %45 = math.rsqrt %44 : vector<1x128xf32>
    %46 = vector.broadcast %45 : vector<1x128xf32> to vector<64x128xf32>
    %47 = arith.mulf %37, %46 : vector<64x128xf32>
    %48 = vector.broadcast %16 : vector<1x128xf32> to vector<64x128xf32>
    %49 = arith.mulf %47, %48 : vector<64x128xf32>
    %50 = vector.broadcast %17 : vector<1x128xf32> to vector<64x128xf32>
    %51 = arith.addf %49, %50 : vector<64x128xf32>
    %c0_23 = arith.constant 0 : index
    %c0_24 = arith.constant 0 : index
    %52 = vector.load %arg10[%c0_23, %c0_24] : memref<64x128xf32, #tpu.memory_space<vmem>>, vector<64x128xf32>
    tpu.vector_store %arg10[%c0_23, %c0_24], %51 {strides = array<i32>} : memref<64x128xf32, #tpu.memory_space<vmem>>, vector<64x128xf32>,
    %c0_25 = arith.constant 0 : index
    %c0_26 = arith.constant 0 : index
    %c0_27 = arith.constant 0 : index
    %53 = vector.load %arg8[%c0_25, %c0_26, %c0_27] : memref<1x64x128xf32, #tpu.memory_space<vmem>>, vector<1x64x128xf32>
    %54 = vector.shape_cast %53 : vector<1x64x128xf32> to vector<64x128xf32>
    %55 = vector.shape_cast %51 : vector<64x128xf32> to vector<1x64x128xf32>
    tpu.vector_store %arg8[%c0_25, %c0_26, %c0_27], %55 {strides = array<i32>} : memref<1x64x128xf32, #tpu.memory_space<vmem>>, vector<1x64x128xf32>,
    %c0_28 = arith.constant 0 : index
    %c0_29 = arith.constant 0 : index
    %56 = vector.load %arg7[%c0_28, %c0_29] : memref<4x64xf32, #tpu.memory_space<vmem>>, vector<4x64xf32>
    %cst_30 = arith.constant dense<0.000000e+00> : vector<4x128xf32>
    %57 = tpu.matmul %56, %51, %cst_30 {dimension_numbers = #tpu.dot_dimension_numbers<[1], [0], [0], [1], [0, 0, 1, 1], [], []>} : vector<4x64xf32>, vector<64x128xf32>, vector<4x128xf32> -> vector<4x128xf32>
    %c0_31 = arith.constant 0 : index
    %c0_32 = arith.constant 0 : index
    %c0_33 = arith.constant 0 : index
    %58 = vector.load %arg9[%c0_31, %c0_32, %c0_33] : memref<1x4x128xf32, #tpu.memory_space<vmem>>, vector<1x4x128xf32>
    %59 = vector.shape_cast %58 : vector<1x4x128xf32> to vector<4x128xf32>
    %60 = vector.shape_cast %57 : vector<4x128xf32> to vector<1x4x128xf32>
    tpu.vector_store %arg9[%c0_31, %c0_32, %c0_33], %60 {strides = array<i32>} : memref<1x4x128xf32, #tpu.memory_space<vmem>>, vector<1x4x128xf32>,
    return
  }
  func.func @transform_0(%arg0: i32, %arg1: memref<3xf32, #tpu.memory_space<smem>>) -> (i32, i32) {
    %c0_i32 = arith.constant 0 : i32
    %c0_i32_0 = arith.constant 0 : i32
    %c0_i32_1 = arith.constant 0 : i32
    return %c0_i32, %c0_i32_0 : i32, i32
  }
  func.func @transform_1(%arg0: i32, %arg1: memref<3xf32, #tpu.memory_space<smem>>) -> (i32, i32) {
    %c0_i32 = arith.constant 0 : i32
    %c0_i32_0 = arith.constant 0 : i32
    %c0_i32_1 = arith.constant 0 : i32
    return %c0_i32, %c0_i32_0 : i32, i32
  }
  func.func @transform_2(%arg0: i32, %arg1: memref<3xf32, #tpu.memory_space<smem>>) -> (i32, i32, i32) {
    %c0_i32 = arith.constant 0 : i32
    %c0_i32_0 = arith.constant 0 : i32
    %c0_i32_1 = arith.constant 0 : i32
    return %arg0, %c0_i32, %c0_i32_0 : i32, i32, i32
  }
  func.func @transform_3(%arg0: i32, %arg1: memref<3xf32, #tpu.memory_space<smem>>) -> (i32, i32, i32) {
    %c0_i32 = arith.constant 0 : i32
    %c0_i32_0 = arith.constant 0 : i32
    %c0_i32_1 = arith.constant 0 : i32
    return %arg0, %c0_i32, %c0_i32_0 : i32, i32, i32
  }
  func.func @transform_4(%arg0: i32, %arg1: memref<3xf32, #tpu.memory_space<smem>>) -> (i32, i32, i32) {
    %c0_i32 = arith.constant 0 : i32
    %c0_i32_0 = arith.constant 0 : i32
    %c0_i32_1 = arith.constant 0 : i32
    return %arg0, %c0_i32, %c0_i32_0 : i32, i32, i32
  }
  func.func @transform_5(%arg0: i32, %arg1: memref<3xf32, #tpu.memory_space<smem>>) -> (i32, i32) {
    %c0_i32 = arith.constant 0 : i32
    %c0_i32_0 = arith.constant 0 : i32
    %c0_i32_1 = arith.constant 0 : i32
    return %c0_i32, %c0_i32_0 : i32, i32
  }
  func.func @transform_6(%arg0: i32, %arg1: memref<3xf32, #tpu.memory_space<smem>>) -> (i32, i32, i32) {
    %c0_i32 = arith.constant 0 : i32
    %c0_i32_0 = arith.constant 0 : i32
    %c0_i32_1 = arith.constant 0 : i32
    return %arg0, %c0_i32, %c0_i32_0 : i32, i32, i32
  }
  func.func @transform_7(%arg0: i32, %arg1: memref<3xf32, #tpu.memory_space<smem>>) -> (i32, i32, i32) {
    %c0_i32 = arith.constant 0 : i32
    %c0_i32_0 = arith.constant 0 : i32
    %c0_i32_1 = arith.constant 0 : i32
    return %arg0, %c0_i32, %c0_i32_0 : i32, i32, i32
  }
}

</mosaic_0001>

<bundles_post_ra>
// kernel: encoder_forward.1
= control target key start
LH: loop header
LB: loop body
LE: loop exit
PB: predicated region body
PF: predicated region fallthrough
CT: control target
= control target key end

     0   :  { %s1706_s0 = inlined_call_operand.vmem [shape: f32[3], index: 0, kind: input, shape index: {}]   ;;  %s1707_s1 = inlined_call_operand.vmem [shape: f32[64,128], index: 1, kind: input, shape index: {}]   ;;  %s1708_s2 = inlined_call_operand.vmem [shape: bf16[64,64], index: 2, kind: input, shape index: {}]   ;;  %s1709_s3 = inlined_call_operand.vmem [shape: f32[3,128,128], index: 3, kind: input, shape index: {}]   ;;  %s1710_s4 = inlined_call_operand.vmem [shape: f32[3,128,128], index: 4, kind: input, shape index: {}]   ;;  %s1711_s5 = inlined_call_operand.vmem [shape: f32[3,4,128], index: 5, kind: input, shape index: {}]   ;;  %s1712_s6 = inlined_call_operand.vmem [shape: f32[4,64], index: 6, kind: input, shape index: {}]   ;;  %s1713_s7 = inlined_call_operand.vmem [shape: f32[3,64,128], index: 7, kind: output, shape index: {0}]   ;;  %s1714_s8 = inlined_call_operand.vmem [shape: f32[3,4,128], index: 8, kind: output, shape index: {1}]  }
   0x1   :  { %s14_s29 = sshll.u32 %s1706_s0, 4  ;;  %s15_s29 = int_to_ptr.vmem [resolvable:$true] %s14_s29 }
   0x2   :  { %s1444_s30 = scalar_lea.vmem %s15_s29, 16  ;;  %p1449_p1 = scmp.lt.s32.totalorder %s15_s29, %s15_s29 }
   0x3   :  { %p1445_p0 = scmp.ne.s32.totalorder %s15_s29, %s1444_s30  ;;  %p1450_p2 = scmp.lt.s32.totalorder %s1444_s30, %s1444_s30 }
   0x5   :  { %p1451_p3 = por %p1450_p2, %p1449_p1 }
   0x7   :  { %p1452_p4 = pnand %p1451_p3, %p1445_p0 }
   0x9   :  { %1455 = shalt.err (!%p1452_p4)  }
   0xa   :  { %s1466_s9 = smov [#allocation5]  }
   0xb   :  { %17 = dma.vmem_to_smem %s15_s29, 16, %s1466_s9, [#allocation4] }
   0xc   :  { %1460 = dma.done.wait [#allocation4], 16 }
   0xd   :  { %1461 = vsyncadd [#allocation4], 4294967280 }
   0xe   :  { %19 = sfence }
   0xf   :  { %s1518_s10 = smov 0  }
  0x10 LB: > { %s1524_s0 = sadd.s32 4294967295, %s1464_s10   ;;  %p1087_p5 = scmp.ge.s32.totalorder %s1464_s10, 1  ;;  %s1464_s10 = sphi %s1518_s10, %s25_s10  }
  0x11   : > { %p266_p6 = scmp.lt.s32.totalorder %s1464_s10, 4 }
  0x13   : > { %p267_p7 = pnand %p1087_p5, %p266_p6 }
  0x14   : > { %p311_p8 = scmp.lt.s32.totalorder (!%p267_p7), %s1524_s0, 2  ;;  %p1096_p9 = scmp.ne.s32.totalorder (!%p267_p7), %s1524_s0, 0 }
  0x15   : > { %270 = sbr.rel (%p267_p7) target bundleno = 1022 (0x3fe), region = 44 }
  0x1c   : > { %s312_s11 = scalar_select %p311_p8, %s1524_s0, 2 }
  0x1d   : > { %337 = sbr.rel (%p1096_p9) target bundleno = 39 (0x27), region = 48  ;;  %v338_v0 = vld [vmem:[%s1707_s1] sm:$0xff] (!%p1096_p9)  ;;  %v339_v1 = vld [vmem:[%s1707_s1 + $0x8] sm:$0xff] (!%p1096_p9)  ;;  %v340_v2 = vld [vmem:[%s1707_s1 + $0x10] sm:$0xff] (!%p1096_p9)  ;;  %vm370_vm0 = vcmask (!%p1096_p9), 523264  }
  0x1e   : > { %s1108_s12 = sshll.u32 %s312_s11, 7  ;;  %s1092_s13 = sshll.u32 %s312_s11, 2  ;;  %346 = vst [vmem:[#allocation2] sm:$0xff] (!%p1096_p9), %v338_v0  ;;  %347 = vst [vmem:[#allocation2 + $0x8] sm:$0xff] (!%p1096_p9), %v339_v1  ;;  %v341_v3 = vld [vmem:[%s1707_s1 + $0x18] sm:$0xff] (!%p1096_p9)  ;;  %v342_v4 = vld [vmem:[%s1707_s1 + $0x20] sm:$0xff] (!%p1096_p9) }
  0x1f   : > { %s1533_s16 = scalar_lea.vmem %s1709_s3, %s1108_s12  ;;  %s1538_s19 = scalar_lea.vmem %s1710_s4, %s1108_s12  ;;  %348 = vst [vmem:[#allocation2 + $0x10] sm:$0xff] (!%p1096_p9), %v340_v2  ;;  %v343_v5 = vld [vmem:[%s1707_s1 + $0x28] sm:$0xff] (!%p1096_p9)  ;;  %349 = vst [vmem:[#allocation2 + $0x18] sm:$0xff] (!%p1096_p9), %v341_v3  ;;  %v344_v6 = vld [vmem:[%s1707_s1 + $0x30] sm:$0xff] (!%p1096_p9) }
  0x20   : > { %s1543_s22 = scalar_lea.vmem %s1711_s5, %s1092_s13  ;;  %s1110_s23 = sshll.u32 %s312_s11, 6  ;;  %350 = vst [vmem:[#allocation2 + $0x20] sm:$0xff] (!%p1096_p9), %v342_v4  ;;  %351 = vst [vmem:[#allocation2 + $0x28] sm:$0xff] (!%p1096_p9), %v343_v5  ;;  %v345_v7 = vld [vmem:[%s1707_s1 + $0x38] sm:$0xff] (!%p1096_p9)  ;;  %v1112_v8 = vld [vmem:[%s1708_s2] sm:$0xff] (!%p1096_p9)  }
  0x21   : > { %s1548_s26 = scalar_lea.vmem %s1713_s7, %s1110_s23  ;;  %s1553_s29 = scalar_lea.vmem %s1714_s8, %s1092_s13  ;;  %352 = vst [vmem:[#allocation2 + $0x30] sm:$0xff] (!%p1096_p9), %v344_v6  ;;  %353 = vst [vmem:[#allocation2 + $0x38] sm:$0xff] (!%p1096_p9), %v345_v7  ;;  %v1113_v9 = vunpack.c.l.bf16 (!%p1096_p9), %v1112_v8  ;;  %v1114_v10 = vunpack.c.h.bf16 (!%p1096_p9), %v1112_v8  ;;  %v1127_v11 = vld [vmem:[%s1708_s2 + $0x8] sm:$0xff] (!%p1096_p9)   ;;  %v1128_v12 = vld [vmem:[%s1708_s2 + $0x10] sm:$0xff] (!%p1096_p9)  }
  0x22   : > { %v1129_v13 = vld [vmem:[%s1708_s2 + $0x18] sm:$0xff] (!%p1096_p9)   ;;  %v1117_v14 = vunpack.c.l.bf16 (!%p1096_p9), %v1127_v11  ;;  %v1118_v15 = vunpack.c.h.bf16 (!%p1096_p9), %v1127_v11  ;;  %v1121_v16 = vunpack.c.l.bf16 (!%p1096_p9), %v1128_v12  ;;  %v1122_v17 = vunpack.c.h.bf16 (!%p1096_p9), %v1128_v12 }
  0x23   : > { %371 = vst.msk [vmem:[#allocation3] sm:$0xff] (!%p1096_p9), %vm370_vm0, %v1113_v9  ;;  %372 = vst.msk [vmem:[#allocation3 + $0x8] sm:$0xff] (!%p1096_p9), %vm370_vm0, %v1114_v10  ;;  %v1125_v18 = vunpack.c.l.bf16 (!%p1096_p9), %v1129_v13  ;;  %v1126_v19 = vunpack.c.h.bf16 (!%p1096_p9), %v1129_v13 }
  0x24   : > { %373 = vst.msk [vmem:[#allocation3 + $0x10] sm:$0xff] %vm370_vm0, %v1117_v14  ;;  %374 = vst.msk [vmem:[#allocation3 + $0x18] sm:$0xff] %vm370_vm0, %v1118_v15 }
  0x25   : > { %375 = vst.msk [vmem:[#allocation3 + $0x20] sm:$0xff] %vm370_vm0, %v1121_v16  ;;  %376 = vst.msk [vmem:[#allocation3 + $0x28] sm:$0xff] %vm370_vm0, %v1122_v17 }
  0x26   : > { %377 = vst.msk [vmem:[#allocation3 + $0x30] sm:$0xff] %vm370_vm0, %v1125_v18  ;;  %378 = vst.msk [vmem:[#allocation3 + $0x38] sm:$0xff] %vm370_vm0, %v1126_v19 }
  0x27 PF: > { %vm406_vm1 = vcmask 523264   ;;  %v537_v31 = vld [vmem:[%s1533_s16] sm:$0xff]  ;;  %v538_v32 = vld [vmem:[%s1533_s16 + $0x8] sm:$0xff]  ;;  %v539_v35 = vld [vmem:[%s1533_s16 + $0x10] sm:$0xff]  ;;  %vm1468_vm2 = vmmov 0  }
  0x28   : > { %v1600_v20 = vld [vmem:[#allocation2] sm:$0xff]  ;;  %v1602_v21 = vld [vmem:[#allocation2 + $0x8] sm:$0xff]  ;;  %v1354_v34 = vpack.c.bf16 %v538_v32, %v537_v31  ;;  %v540_v36 = vld [vmem:[%s1533_s16 + $0x18] sm:$0xff] }
  0x29   : > { %v1604_v22 = vld [vmem:[#allocation2 + $0x10] sm:$0xff]  ;;  %v1338_v23 = vpack.c.bf16 %v1602_v21, %v1600_v20  ;;  %v1608_v24 = vld [vmem:[#allocation2 + $0x18] sm:$0xff]  ;;  %v1358_v37 = vpack.c.bf16 %v540_v36, %v539_v35  ;;  %v541_v38 = vld [vmem:[%s1533_s16 + $0x20] sm:$0xff] }
  0x2a   : > { %v1342_v25 = vpack.c.bf16 %v1608_v24, %v1604_v22  ;;  %v1612_v26 = vld [vmem:[#allocation2 + $0x20] sm:$0xff]  ;;  %v1614_v27 = vld [vmem:[#allocation2 + $0x28] sm:$0xff]  ;;  %1355 = vmatprep.subr.bf16.mxu1 %v1354_v34  ;;  %v543_v42 = vld [vmem:[%s1533_s16 + $0x30] sm:$0xff] }
  0x2b   : > { %1339 = vmatprep.subr.bf16.mxu0 %v1338_v23  ;;  %v1346_v29 = vpack.c.bf16 %v1614_v27, %v1612_v26  ;;  %v1619_v30 = vld [vmem:[#allocation2 + $0x30] sm:$0xff]  ;;  %v1623_v33 = vld [vmem:[#allocation2 + $0x38] sm:$0xff]  ;;  %v542_v39 = vld [vmem:[%s1533_s16 + $0x28] sm:$0xff]  ;;  %1357 = vmatpush3.bf16.msra.mxu1 %v1354_v34 }
  0x2c   : > { %1341 = vmatpush3.bf16.msra.mxu0 %v1338_v23  ;;  %v1350_v40 = vpack.c.bf16 %v1623_v33, %v1619_v30  ;;  %1359 = vmatprep.subr.bf16.mxu1 %v1358_v37  ;;  %v1362_v41 = vpack.c.bf16 %v542_v39, %v541_v38  ;;  %v544_v43 = vld [vmem:[%s1533_s16 + $0x38] sm:$0xff]  ;;  %v545_v45 = vld [vmem:[%s1533_s16 + $0x40] sm:$0xff]  ;;  %v546_v46 = vld [vmem:[%s1533_s16 + $0x48] sm:$0xff] }
  0x2d   : > { %v388_v28 = vld [vmem:[#allocation3] sm:$0xff]  ;;  %1343 = vmatprep.subr.bf16.mxu0 %v1342_v25  ;;  %v1366_v44 = vpack.c.bf16 %v544_v43, %v543_v42  ;;  %v389_v47 = vld [vmem:[#allocation3 + $0x8] sm:$0xff]  ;;  %v390_v48 = vld [vmem:[#allocation3 + $0x10] sm:$0xff]  ;;  %v1370_v49 = vpack.c.bf16 %v546_v46, %v545_v45 }
  0x2e   : > { %1219 = vmatprep.mubr.msk.f32.mxu0 %vm406_vm1, %v388_v28  ;;  %v547_v50 = vld [vmem:[%s1533_s16 + $0x50] sm:$0xff]  ;;  %v548_v51 = vld [vmem:[%s1533_s16 + $0x58] sm:$0xff]  ;;  %v392_v53 = vld [vmem:[#allocation3 + $0x20] sm:$0xff] }
  0x2f   : > { %1361 = vmatpush3.bf16.msra.mxu1 %v1358_v37  ;;  %v391_v52 = vld [vmem:[#allocation3 + $0x18] sm:$0xff]  ;;  %v1374_v54 = vpack.c.bf16 %v548_v51, %v547_v50  ;;  %v549_v55 = vld [vmem:[%s1533_s16 + $0x60] sm:$0xff]  ;;  %v550_v56 = vld [vmem:[%s1533_s16 + $0x68] sm:$0xff]  ;;  %v553_v51 = vlaneseq }
  0x30   : > { %1345 = vmatpush3.bf16.msra.mxu0 %v1342_v25  ;;  %1363 = vmatprep.subr.bf16.mxu1 %v1362_v41  ;;  %v393_v57 = vld [vmem:[#allocation3 + $0x28] sm:$0xff]  ;;  %v394_v58 = vld [vmem:[#allocation3 + $0x30] sm:$0xff]  ;;  %v1378_v59 = vpack.c.bf16 %v550_v56, %v549_v55  ;;  %v395_v60 = vld [vmem:[#allocation3 + $0x38] sm:$0xff] }
  0x31   : > { %1347 = vmatprep.subr.bf16.mxu0 %v1346_v29  ;;  %v551_v61 = vld [vmem:[%s1533_s16 + $0x70] sm:$0xff]  ;;  %v552_v62 = vld [vmem:[%s1533_s16 + $0x78] sm:$0xff]  ;;  %v670_v0 = vld [vmem:[%s1538_s19] sm:$0xff]  ;;  %s387_s16 = sld [smem:[#allocation5 + %s1524_s0]] }
  0x32   : > { %v1382_v63 = vpack.c.bf16 %v552_v62, %v551_v61  ;;  %v671_v1 = vld [vmem:[%s1538_s19 + $0x8] sm:$0xff]  ;;  %v672_v2 = vld [vmem:[%s1538_s19 + $0x10] sm:$0xff]  ;;  %v673_v4 = vld [vmem:[%s1538_s19 + $0x18] sm:$0xff] }
  0x33   : > { %1365 = vmatpush3.bf16.msra.mxu1 %v1362_v41  ;;  %v1386_v3 = vpack.c.bf16 %v671_v1, %v670_v0  ;;  %v1390_v5 = vpack.c.bf16 %v673_v4, %v672_v2  ;;  %v674_v6 = vld [vmem:[%s1538_s19 + $0x20] sm:$0xff]  ;;  %v675_v7 = vld [vmem:[%s1538_s19 + $0x28] sm:$0xff]  ;;  %v676_v9 = vld [vmem:[%s1538_s19 + $0x30] sm:$0xff] }
  0x34   : > { %1349 = vmatpush3.bf16.msra.mxu0 %v1346_v29  ;;  %1367 = vmatprep.subr.bf16.mxu1 %v1366_v44  ;;  %v1394_v8 = vpack.c.bf16 %v675_v7, %v674_v6  ;;  %v677_v10 = vld [vmem:[%s1538_s19 + $0x38] sm:$0xff]  ;;  %v678_v12 = vld [vmem:[%s1538_s19 + $0x40] sm:$0xff]  ;;  %v679_v13 = vld [vmem:[%s1538_s19 + $0x48] sm:$0xff] }
  0x35   : > { %1351 = vmatprep.subr.bf16.mxu0 %v1350_v40  ;;  %v1398_v11 = vpack.c.bf16 %v677_v10, %v676_v9  ;;  %v1402_v14 = vpack.c.bf16 %v679_v13, %v678_v12  ;;  %v680_v15 = vld [vmem:[%s1538_s19 + $0x50] sm:$0xff]  ;;  %v681_v16 = vld [vmem:[%s1538_s19 + $0x58] sm:$0xff]  ;;  %v682_v18 = vld [vmem:[%s1538_s19 + $0x60] sm:$0xff] }
  0x36   : > { %v1406_v17 = vpack.c.bf16 %v681_v16, %v680_v15  ;;  %v683_v19 = vld [vmem:[%s1538_s19 + $0x68] sm:$0xff]  ;;  %v1469_v15 = vmov 0.0  }
  0x37   : > { %1369 = vmatpush3.bf16.msra.mxu1 %v1366_v44  ;;  %v1410_v23 = vpack.c.bf16 %v683_v19, %v682_v18  ;;  %s396_s18 = sadd.f32 1.0, %s387_s16 }
  0x38   : > { %1353 = vmatpush3.bf16.msra.mxu0 %v1350_v40  ;;  %1371 = vmatprep.subr.bf16.mxu1 %v1370_v49 }
  0x39   : > { %1387 = vmatprep.subr.bf16.mxu0 %v1386_v3  ;;  %v397_v25 = vstv %s396_s18 }
  0x3a   : > { %v398_v28 = vmul.f32 %v397_v25, %v1600_v20  ;;  %v399_v29 = vmul.f32 %v397_v25, %v1602_v21  ;;  %v400_v35 = vmul.f32 %v397_v25, %v1604_v22  ;;  %v401_v37 = vmul.f32 %v397_v25, %v1608_v24 }
  0x3b   : > { %1220 = vmatmul.mubr.msk.f32.vlgmr.msra.gmra.mrb[0].mxu0 %vm406_vm1, %v389_v47  ;;  %1373 = vmatpush3.bf16.msra.mxu1 %v1370_v49  ;;  %v402_v41 = vmul.f32 %v397_v25, %v1612_v26  ;;  %v403_v20 = vmul.f32 %v397_v25, %v1614_v27  ;;  %v404_v44 = vmul.f32 %v397_v25, %v1619_v30  ;;  %v684_v27 = vld [vmem:[%s1538_s19 + $0x70] sm:$0xff]  ;;  %v685_v49 = vld [vmem:[%s1538_s19 + $0x78] sm:$0xff] }
  0x3c   : > { %1222 = vmatprep.mubr.msk.f32.mxu0 %vm406_vm1, %v390_v48  ;;  %1375 = vmatprep.subr.bf16.mxu1 %v1374_v54  ;;  %v405_v45 = vmul.f32 %v397_v25, %v1623_v33  ;;  %v1414_v50 = vpack.c.bf16 %v685_v49, %v684_v27  ;;  %v1677_v33 = vld [vmem:[%s1543_s22] sm:$0xf] }
  0x3d   : > { %1389 = vmatpush3.bf16.msra.mxu0 %v1386_v3 }
  0x3e   : > { %1391 = vmatprep.subr.bf16.mxu0 %v1390_v5 }
  0x3f   : > { %1223 = vmatmul.mubr.msk.f32.gmra.mrb[2].mxu0 %vm406_vm1, %v391_v52  ;;  %1377 = vmatpush3.bf16.msra.mxu1 %v1374_v54  ;;  %v1673_v52 = vshrl.u32 %v553_v51, 7 }
  0x40   : > { %1225 = vmatprep.mubr.msk.f32.mxu0 %vm406_vm1, %v392_v53  ;;  %1379 = vmatprep.subr.bf16.mxu1 %v1378_v59 }
  0x41   : > { %1393 = vmatpush3.bf16.msra.mxu0 %v1390_v5  ;;  %v555_v30 = vsub.s32 0, %v1673_v52  ;;  %v688_v16 = vsub.s32 1, %v1673_v52 }
  0x42   : > { %1395 = vmatprep.subr.bf16.mxu0 %v1394_v8 }
  0x43   : > { %1226 = vmatmul.mubr.msk.f32.gmra.mrb[4].mxu0 %vm406_vm1, %v393_v57  ;;  %1381 = vmatpush3.bf16.msra.mxu1 %v1378_v59  ;;  %v556_v53 = vrot.slane %v1677_v33, %v555_v30 }
  0x44   : > { %1228 = vmatprep.mubr.msk.f32.mxu0 %vm406_vm1, %v394_v58  ;;  %1383 = vmatprep.subr.bf16.mxu1 %v1382_v63 }
  0x45   : > { %1397 = vmatpush3.bf16.msra.mxu0 %v1394_v8 }
  0x46   : > { %1399 = vmatprep.subr.bf16.mxu0 %v1398_v11 }
  0x47   : > { %1229 = vmatmul.mubr.msk.f32.gmra.mrb[6].mxu0 %vm406_vm1, %v395_v60  ;;  %1385 = vmatpush3.bf16.msra.mxu1 %v1382_v63 }
  0x49   : > { %1401 = vmatpush3.bf16.msra.mxu0 %v1398_v11 }
  0x4a   : > { %1403 = vmatprep.subr.bf16.mxu0 %v1402_v14 }
  0x4d   : > { %1405 = vmatpush3.bf16.msra.mxu0 %v1402_v14  ;;  %v1467_v14 = vmov 0.0|0.0  }
  0x4e   : > { %1407 = vmatprep.subr.bf16.mxu0 %v1406_v17  ;;  %1418 = vmatprep.subr.bf16.mxu1 %v1467_v14 }
  0x51   : > { %1409 = vmatpush3.bf16.msra.mxu0 %v1406_v17  ;;  %v689_v17 = vrot.slane %v1677_v33, %v688_v16 }
  0x52   : > { %1411 = vmatprep.subr.bf16.mxu0 %v1410_v23 }
  0x55   : > { %1413 = vmatpush3.bf16.msra.mxu0 %v1410_v23 }
  0x56   : > { %1415 = vmatprep.subr.bf16.mxu0 %v1414_v50 }
  0x59   : > { %1417 = vmatpush3.bf16.msra.mxu0 %v1414_v50 }
 0x10e   : > { %v1221_v31 = vpop.f32.mrb[0].mxu0 }
 0x10f   : > { %v497_v32 = vpop.f32.mrb[1].mxu0  ;;  %v503_v36 = vadd.f32 %v1221_v31, %v399_v29 }
 0x110   : > { %v498_v34 = vadd.f32 %v497_v32, %v398_v28 }
 0x112   : > { %v1224_v38 = vpop.f32.mrb[2].mxu0  ;;  %1263 = vmatprep.mubr.f32.mxu1 %v498_v34 }
 0x113   : > { %v507_v39 = vpop.f32.mrb[3].mxu0  ;;  %1264 = vmatmul.mubr.f32.vlgmr.msra.gmra.mrb[0].mxu1 %v503_v36  ;;  %v513_v42 = vadd.f32 %v1224_v38, %v401_v37 }
 0x114   : > { %v508_v40 = vadd.f32 %v507_v39, %v400_v35 }
 0x116   : > { %v1227_v43 = vpop.f32.mrb[4].mxu0  ;;  %1266 = vmatprep.mubr.f32.mxu1 %v508_v40 }
 0x117   : > { %v517_v21 = vpop.f32.mrb[5].mxu0  ;;  %1267 = vmatmul.mubr.f32.gmra.mrb[2].mxu1 %v513_v42  ;;  %v523_v24 = vadd.f32 %v1227_v43, %v403_v20 }
 0x118   : > { %v518_v22 = vadd.f32 %v517_v21, %v402_v41 }
 0x11a   : > { %v1230_v46 = vpop.f32.mrb[6].mxu0  ;;  %1269 = vmatprep.mubr.f32.mxu1 %v518_v22 }
 0x11b   : > { %v527_v47 = vpop.f32.mrb[7].mxu0  ;;  %1270 = vmatmul.mubr.f32.gmra.mrb[4].mxu1 %v523_v24  ;;  %v533_v48 = vadd.f32 %v1230_v46, %v405_v45 }
 0x11c   : > { %v528_v26 = vadd.f32 %v527_v47, %v404_v44 }
 0x11e   : > { %1272 = vmatprep.mubr.f32.mxu1 %v528_v26 }
 0x11f   : > { %1273 = vmatmul.mubr.f32.gmra.mrb[6].mxu1 %v533_v48 }
 0x120   : > { %1335 = vmatprep.mubr.msk.f32.mxu1 %vm1468_vm2, %v1469_v15 }
 0x1e6   : > { %v1265_v54 = vpop.f32.mrb[0].mxu1 }
 0x1e7   : > { %v629_v55 = vadd.f32 %v1265_v54, %v556_v53  ;;  %v623_v56 = vpop.f32.mrb[1].mxu1 }
 0x1e8   : > { %v624_v57 = vadd.f32 %v623_v56, %v556_v53 }
 0x1e9   : > { %v663_v60 = vmax.f32 %v629_v55, 0.0 }
 0x1ea   : > { %v662_v58 = vmax.f32 %v624_v57, 0.0  ;;  %v1268_v59 = vpop.f32.mrb[2].mxu1 }
 0x1eb   : > { %v639_v61 = vadd.f32 %v1268_v59, %v556_v53  ;;  %v633_v62 = vpop.f32.mrb[3].mxu1 }
 0x1ec   : > { %v634_v63 = vadd.f32 %v633_v62, %v556_v53  ;;  %1307 = vmatprep.mubr.f32.mxu0 %v662_v58 }
 0x1ed   : > { %1308 = vmatmul.mubr.f32.vlgmr.msra.gmra.mrb[8].mxu0 %v663_v60  ;;  %v665_v2 = vmax.f32 %v639_v61, 0.0 }
 0x1ee   : > { %v664_v0 = vmax.f32 %v634_v63, 0.0  ;;  %v1271_v1 = vpop.f32.mrb[4].mxu1 }
 0x1ef   : > { %v649_v3 = vadd.f32 %v1271_v1, %v556_v53  ;;  %v643_v4 = vpop.f32.mrb[5].mxu1 }
 0x1f0   : > { %v644_v5 = vadd.f32 %v643_v4, %v556_v53  ;;  %1310 = vmatprep.mubr.f32.mxu0 %v664_v0 }
 0x1f1   : > { %1311 = vmatmul.mubr.f32.gmra.mrb[10].mxu0 %v665_v2  ;;  %v667_v8 = vmax.f32 %v649_v3, 0.0 }
 0x1f2   : > { %v666_v6 = vmax.f32 %v644_v5, 0.0  ;;  %v1274_v7 = vpop.f32.mrb[6].mxu1 }
 0x1f3   : > { %v659_v9 = vadd.f32 %v1274_v7, %v556_v53  ;;  %v653_v10 = vpop.f32.mrb[7].mxu1 }
 0x1f4   : > { %v654_v11 = vadd.f32 %v653_v10, %v556_v53  ;;  %1313 = vmatprep.mubr.f32.mxu0 %v666_v6 }
 0x1f5   : > { %1314 = vmatmul.mubr.f32.gmra.mrb[12].mxu0 %v667_v8  ;;  %v669_v13 = vmax.f32 %v659_v9, 0.0 }
 0x1f6   : > { %v668_v12 = vmax.f32 %v654_v11, 0.0 }
 0x1f8   : > { %1316 = vmatprep.mubr.f32.mxu0 %v668_v12 }
 0x1f9   : > { %1317 = vmatmul.mubr.f32.gmra.mrb[14].mxu0 %v669_v13 }
 0x2c0   : > { %v1309_v18 = vpop.f32.mrb[8].mxu0 }
 0x2c1   : > { %v762_v19 = vadd.f32 %v1309_v18, %v689_v17  ;;  %v756_v23 = vpop.f32.mrb[9].mxu0 }
 0x2c2   : > { %v757_v25 = vadd.f32 %v756_v23, %v689_v17 }
 0x2c3   : > { %v796_v28 = vmax.f32 %v762_v19, 0.0 }
 0x2c4   : > { %v795_v29 = vmax.f32 %v757_v25, 0.0  ;;  %v1312_v31 = vpop.f32.mrb[10].mxu0 }
 0x2c5   : > { %v766_v32 = vpop.f32.mrb[11].mxu0  ;;  %v772_v35 = vadd.f32 %v1312_v31, %v689_v17 }
 0x2c6   : > { %v803_v34 = vadd.f32 %v796_v28, %v795_v29  ;;  %v767_v36 = vadd.f32 %v766_v32, %v689_v17 }
 0x2c7   : > { %v798_v40 = vmax.f32 %v772_v35, 0.0  ;;  %v872_v35 = vsub.s32 3, %v1673_v52 }
 0x2c8   : > { %v797_v37 = vmax.f32 %v767_v36, 0.0  ;;  %v1315_v38 = vpop.f32.mrb[12].mxu0 }
 0x2c9   : > { %v776_v39 = vpop.f32.mrb[13].mxu0  ;;  %v782_v42 = vadd.f32 %v1315_v38, %v689_v17  ;;  %v873_v38 = vrot.slane %v1677_v33, %v872_v35 }
 0x2ca   : > { %v804_v41 = vadd.f32 %v803_v34, %v797_v37  ;;  %v777_v20 = vadd.f32 %v776_v39, %v689_v17  ;;  %v860_v34 = vsub.s32 2, %v1673_v52 }
 0x2cb   : > { %v800_v24 = vmax.f32 %v782_v42, 0.0 }
 0x2cc   : > { %v799_v43 = vmax.f32 %v777_v20, 0.0  ;;  %v805_v21 = vadd.f32 %v804_v41, %v798_v40  ;;  %v1318_v22 = vpop.f32.mrb[14].mxu0  ;;  %v861_v36 = vrot.slane %v1677_v33, %v860_v34 }
 0x2cd   : > { %v786_v44 = vpop.f32.mrb[15].mxu0  ;;  %v792_v46 = vadd.f32 %v1318_v22, %v689_v17 }
 0x2ce   : > { %v806_v45 = vadd.f32 %v805_v21, %v799_v43  ;;  %v787_v47 = vadd.f32 %v786_v44, %v689_v17 }
 0x2cf   : > { %v802_v27 = vmax.f32 %v792_v46, 0.0 }
 0x2d0   : > { %v801_v26 = vmax.f32 %v787_v47, 0.0  ;;  %v807_v48 = vadd.f32 %v806_v45, %v800_v24 }
 0x2d2   : > { %v808_v49 = vadd.f32 %v807_v48, %v801_v26 }
 0x2d4   : > { %v809_v50 = vadd.f32 %v808_v49, %v802_v27 }
 0x2d6   : > { %v810_v51 = vrot.slane %v809_v50, 4 }
 0x2d8   : > { %v811_v30 = vadd.f32 %v810_v51, %v809_v50 }
 0x2da   : > { %v812_v53 = vrot.slane %v811_v30, 2 }
 0x2dc   : > { %v813_v54 = vadd.f32 %v812_v53, %v811_v30 }
 0x2de   : > { %v814_v55 = vrot.slane %v813_v54, 1 }
 0x2e0   : > { %v815_v56 = vadd.f32 %v814_v55, %v813_v54 }
 0x2e2   : > { %v817_v57 = vmul.f32 0.015625, %v815_v56 }
 0x2e4   : > { %v818_v58 = vsub.f32 %v795_v29, %v817_v57  ;;  %v819_v59 = vsub.f32 %v796_v28, %v817_v57  ;;  %v820_v60 = vsub.f32 %v797_v37, %v817_v57  ;;  %v821_v61 = vsub.f32 %v798_v40, %v817_v57 }
 0x2e5   : > { %v822_v62 = vsub.f32 %v799_v43, %v817_v57  ;;  %v823_v63 = vsub.f32 %v800_v24, %v817_v57  ;;  %v824_v0 = vsub.f32 %v801_v26, %v817_v57  ;;  %v825_v1 = vsub.f32 %v802_v27, %v817_v57 }
 0x2e6   : > { %v826_v2 = vmul.f32 %v818_v58, %v818_v58  ;;  %v827_v3 = vmul.f32 %v819_v59, %v819_v59  ;;  %v828_v4 = vmul.f32 %v820_v60, %v820_v60  ;;  %v829_v6 = vmul.f32 %v821_v61, %v821_v61 }
 0x2e7   : > { %v830_v8 = vmul.f32 %v822_v62, %v822_v62  ;;  %v831_v10 = vmul.f32 %v823_v63, %v823_v63  ;;  %v832_v12 = vmul.f32 %v824_v0, %v824_v0  ;;  %v833_v15 = vmul.f32 %v825_v1, %v825_v1 }
 0x2e8   : > { %v834_v5 = vadd.f32 %v827_v3, %v826_v2 }
 0x2ea   : > { %v835_v7 = vadd.f32 %v834_v5, %v828_v4 }
 0x2ec   : > { %v836_v9 = vadd.f32 %v835_v7, %v829_v6 }
 0x2ee   : > { %v837_v11 = vadd.f32 %v836_v9, %v830_v8 }
 0x2f0   : > { %v838_v13 = vadd.f32 %v837_v11, %v831_v10 }
 0x2f2   : > { %v839_v16 = vadd.f32 %v838_v13, %v832_v12 }
 0x2f4   : > { %v840_v17 = vadd.f32 %v839_v16, %v833_v15 }
 0x2f6   : > { %v841_v18 = vrot.slane %v840_v17, 4 }
 0x2f8   : > { %v842_v19 = vadd.f32 %v841_v18, %v840_v17 }
 0x2fa   : > { %v843_v23 = vrot.slane %v842_v19, 2 }
 0x2fc   : > { %v844_v25 = vadd.f32 %v843_v23, %v842_v19 }
 0x2fe   : > { %v845_v28 = vrot.slane %v844_v25, 1 }
 0x300   : > { %v846_v29 = vadd.f32 %v845_v28, %v844_v25 }
 0x302   : > { %v847_v31 = vmul.f32 0.015625, %v846_v29 }
 0x304   : > { %v848_v32 = vadd.f32 1e-05, %v847_v31 }
 0x306   : > { %1442 = vrsqrt.f32 %v848_v32 }
 0x310   : > { %v1443_v37 = vpop.eup %1442 }
 0x311   : > { %v855_v39 = vmul.f32 %v1443_v37, %v823_v63  ;;  %v856_v40 = vmul.f32 %v1443_v37, %v824_v0  ;;  %v857_v41 = vmul.f32 %v1443_v37, %v825_v1  ;;  %v850_v42 = vmul.f32 %v1443_v37, %v818_v58 }
 0x312   : > { %v851_v20 = vmul.f32 %v1443_v37, %v819_v59  ;;  %v852_v43 = vmul.f32 %v1443_v37, %v820_v60  ;;  %v853_v21 = vmul.f32 %v1443_v37, %v821_v61  ;;  %v854_v22 = vmul.f32 %v1443_v37, %v822_v62  ;;  %v898_v59 = vld [vmem:[%s1712_s6] sm:$0xf] }
 0x313   : > { %v868_v44 = vmul.f32 %v861_v36, %v856_v40  ;;  %v862_v24 = vmul.f32 %v861_v36, %v850_v42  ;;  %v867_v45 = vmul.f32 %v861_v36, %v855_v39  ;;  %v869_v46 = vmul.f32 %v861_v36, %v857_v41 }
 0x314   : > { %v863_v52 = vmul.f32 %v861_v36, %v851_v20  ;;  %v864_v47 = vmul.f32 %v861_v36, %v852_v43  ;;  %v865_v26 = vmul.f32 %v861_v36, %v853_v21  ;;  %v866_v48 = vmul.f32 %v861_v36, %v854_v22 }
 0x315   : > { %v880_v33 = vadd.f32 %v873_v38, %v868_v44  ;;  %v874_v27 = vadd.f32 %v873_v38, %v862_v24  ;;  %v879_v49 = vadd.f32 %v873_v38, %v867_v45  ;;  %v881_v50 = vadd.f32 %v873_v38, %v869_v46 }
 0x316   : > { %v875_v51 = vadd.f32 %v873_v38, %v863_v52  ;;  %v876_v30 = vadd.f32 %v873_v38, %v864_v47  ;;  %v877_v53 = vadd.f32 %v873_v38, %v865_v26  ;;  %v878_v54 = vadd.f32 %v873_v38, %v866_v48 }
 0x317   : > { %888 = vst [vmem:[#allocation2 + $0x30] sm:$0xff] %v880_v33  ;;  %896 = vst [vmem:[%s1548_s26 + $0x30] sm:$0xff] %v880_v33  ;;  %v1428_v55 = vpack.c.bf16 %v881_v50, %v880_v33 }
 0x318   : > { %882 = vst [vmem:[#allocation2] sm:$0xff] %v874_v27  ;;  %890 = vst [vmem:[%s1548_s26] sm:$0xff] %v874_v27  ;;  %v1419_v56 = vpack.c.bf16 %v875_v51, %v874_v27  ;;  %v1422_v57 = vpack.c.bf16 %v877_v53, %v876_v30  ;;  %v1425_v58 = vpack.c.bf16 %v879_v49, %v878_v54 }
 0x319   : > { %887 = vst [vmem:[#allocation2 + $0x28] sm:$0xff] %v879_v49  ;;  %895 = vst [vmem:[%s1548_s26 + $0x28] sm:$0xff] %v879_v49 }
 0x31a   : > { %889 = vst [vmem:[#allocation2 + $0x38] sm:$0xff] %v881_v50  ;;  %897 = vst [vmem:[%s1548_s26 + $0x38] sm:$0xff] %v881_v50  ;;  %1420 = vmatpush3.bf16.msra.mxu1 %v1419_v56 }
 0x31b   : > { %883 = vst [vmem:[#allocation2 + $0x8] sm:$0xff] %v875_v51  ;;  %891 = vst [vmem:[%s1548_s26 + $0x8] sm:$0xff] %v875_v51  ;;  %1421 = vmatprep.subr.bf16.mxu1 %v1467_v14 }
 0x31c   : > { %884 = vst [vmem:[#allocation2 + $0x10] sm:$0xff] %v876_v30  ;;  %885 = vst [vmem:[#allocation2 + $0x18] sm:$0xff] %v877_v53 }
 0x31d   : > { %892 = vst [vmem:[%s1548_s26 + $0x10] sm:$0xff] %v876_v30  ;;  %893 = vst [vmem:[%s1548_s26 + $0x18] sm:$0xff] %v877_v53 }
 0x31e   : > { %886 = vst [vmem:[#allocation2 + $0x20] sm:$0xff] %v878_v54  ;;  %894 = vst [vmem:[%s1548_s26 + $0x20] sm:$0xff] %v878_v54  ;;  %1423 = vmatpush3.bf16.msra.mxu1 %v1422_v57 }
 0x31f   : > { %1424 = vmatprep.subr.bf16.mxu1 %v1467_v14 }
 0x322   : > { %1426 = vmatpush3.bf16.msra.mxu1 %v1425_v58 }
 0x323   : > { %1427 = vmatprep.subr.bf16.mxu1 %v1467_v14 }
 0x326   : > { %1429 = vmatpush3.bf16.msra.mxu1 %v1428_v55 }
 0x329   : > { %1336 = vmatmul.mubr.msk.f32.vlgmr.msra.gmra.mrb[8].mxu1 %vm406_vm1, %v898_v59 }
 0x3fc   : > { %v968_v60 = vpop.f32.mrb[8].mxu1 }
 0x3fd   : > { %972 = vst [vmem:[%s1553_s29] sm:$0xf] %v968_v60  ;;  %v1337_v61 = vpop.f32.mrb[9].mxu1 }
 0x3fe PF: > { %s25_s10 = sadd.s32 1, %s1464_s10  }
 0x3ff   : > { %p22_p10 = scmp.ge.s32.totalorder %s25_s10, 5  }
 0x401   :  { %24 = sbr.rel (!%p22_p10) target bundleno = 16 (0x10), region = 96 }

</bundles_post_ra>
